<compile_context>
chip_gen: v5e
topology: v5e:2x2
jax: 0.10.0
libtpu: 0.0.40
codegen_flags: <defaults>
</compile_context>

<pallas_src>
import dataclasses

import jax
import jax.numpy as jnp
from jax.experimental import pallas as pl
from jax.experimental.pallas import tpu as pltpu


ATTR_NAMES = ("color",)  # bk.attr_names equivalent for this self-contained demo


# ----------------------------------------------------------------------------
# Minimal language machinery (stands in for alpha's lang / terms / atoms).
# ----------------------------------------------------------------------------
@dataclasses.dataclass(frozen=True)
class Term:
    name: str
    dtype_name: str


@dataclasses.dataclass(frozen=True)
class Pred:
    name: str


@dataclasses.dataclass(frozen=True)
class Atom:
    pred: Pred
    terms: tuple


class Language:
    def __init__(self, consts_by_dtype):
        self._consts = {k: tuple(v) for k, v in consts_by_dtype.items()}

    def get_by_dtype_name(self, dtype_name):
        return list(self._consts.get(dtype_name, ()))

    def term_index(self, term):
        return self._consts[term.dtype_name].index(term)  # Python int (static)


# ----------------------------------------------------------------------------
# Fused FCNN valuation kernel.
# ----------------------------------------------------------------------------
def _make_fcnn_kernel(obj_idx, attr_idx):
    """Builds the fused valuation kernel, specialized on the (static) grounded
    object index and attribute index -- mirroring the Python-level dispatch of
    the PyTorch module (each ground atom yields static indices)."""

    def kernel(zs_ref, w1o_ref, w1a_ref, b1_ref, w2_ref, b2_ref, out_ref):
        # Select this object's features: static index into the VMEM-resident
        # object-centric tensor (tiny; no DMA gather needed).
        obj = zs_ref[:, obj_idx, :]                              # (B, OBJ_DIM) f32

        # Layer 1 on the MXU: bf16 operands, f32 accumulation.
        h = jnp.dot(obj.astype(jnp.bfloat16), w1o_ref[...],
                    preferred_element_type=jnp.float32)          # (B, HIDDEN) f32

        # Attribute one-hot encoding folded into the weights:
        #   onehot(attr_idx) @ W1_attr == W1_attr[attr_idx, :]
        # Combined with the layer-1 bias into one (1, HIDDEN) row add (VPU).
        bias1 = b1_ref[...]
        if attr_idx is not None:
            bias1 = bias1 + w1a_ref[attr_idx:attr_idx + 1, :]    # (1, HIDDEN) f32
        h = jnp.maximum(h + bias1, 0.0)                          # ReLU in f32

        # Layer 2 on the MXU (output padded to 128 lanes; column 0 is real),
        # keeping the store unmasked / lane-dense.
        y = jnp.dot(h.astype(jnp.bfloat16), w2_ref[...],
                    preferred_element_type=jnp.float32)          # (B, OUT_PAD) f32
        y = y + b2_ref[...]

        # Sigmoid epilogue in f32 (exp goes to the EUP slot; it is free filler
        # next to the matmuls), then a single unmasked 128-lane store.
        out_ref[...] = 1.0 / (1.0 + jnp.exp(-y))

    return kernel


def fcnn_valuation_forward(pred_args, params):
    """The valuation function (vf) for a predicate: one fused Pallas kernel."""
    zs = pred_args["group_data"]                    # (B, N_OBJ, OBJ_DIM) f32
    obj_idx = int(pred_args["object"])              # static python int

    attr_idx = None
    for attr_name in ATTR_NAMES:
        if attr_name in pred_args:
            attr_idx, _num_cls = pred_args[attr_name]
            attr_idx = int(attr_idx)
            break

    w1_obj = params["w1_obj"]                       # (OBJ_DIM, HIDDEN) bf16
    w1_attr = params["w1_attr"]                     # (NUM_CLS, HIDDEN) f32
    b1 = params["b1"]                               # (1, HIDDEN) f32
    w2 = params["w2"]                               # (HIDDEN, OUT_PAD) bf16 (col 0 real)
    b2 = params["b2"]                               # (1, OUT_PAD) f32

    batch = zs.shape[0]
    out_pad = w2.shape[1]

    kernel = _make_fcnn_kernel(obj_idx, attr_idx)
    probs_padded = pl.pallas_call(
        kernel,
        out_shape=jax.ShapeDtypeStruct((batch, out_pad), jnp.float32),
        # Single invocation, whole arrays resident in VMEM (all tiny; no tiling
        # or grid needed -- a grid would only add per-step overhead here).
        in_specs=[pl.BlockSpec(memory_space=pltpu.MemorySpace.VMEM)] * 6,
        out_specs=pl.BlockSpec(memory_space=pltpu.MemorySpace.VMEM),
    )(zs, w1_obj, w1_attr, b1, w2, b2)

    # Lane-dense output slab; the single real probability column is sliced here
    # (wrapper-side layout plumbing, avoids a masked 1-wide store in-kernel).
    return probs_padded[:, 0]


# ----------------------------------------------------------------------------
# FCNNValuationModule (JAX/Pallas port).
# ----------------------------------------------------------------------------
class FCNNValuationModule:
    def __init__(self, pred_funs, lang):
        self.lang = lang
        self.vfs = dict(pred_funs)                    # pred name -> vf params
        self.attrs = self.init_attr_encodings()

    def init_attr_encodings(self):
        attrs = {}
        for dtype_name in ATTR_NAMES:
            terms = self.lang.get_by_dtype_name(dtype_name)
            num_cls = len(terms)
            for term in terms:
                attrs[term] = (self.lang.term_index(term), num_cls)
        return attrs

    def forward(self, zs, atom):
        if atom.pred.name in self.vfs:
            pred_args = {}
            for term in atom.terms:
                term_name, term_data = self.ground_to_tensor(term, zs)
                pred_args[term_name] = term_data
            return fcnn_valuation_forward(pred_args, self.vfs[atom.pred.name])
        # Unknown predicate: constant zeros -- no kernel launch, no extra HLO.
        return jnp.zeros((1,), jnp.float32)

    def ground_to_tensor(self, term, group_data):
        term_name = term.dtype_name
        if term_name in ("group_data", "group_objects_data", "pattern"):
            return ("group_data", group_data)
        if term_name == "object":
            return ("object", self.lang.term_index(term))
        if term_name in ATTR_NAMES:
            return (term_name, self.attrs[term])
        raise ValueError(f"Invalid datatype of the given term: {term}:{term_name}")


# ----------------------------------------------------------------------------
# Demo / self-test.
# ----------------------------------------------------------------------------
if __name__ == "__main__":
    BATCH, N_OBJ, OBJ_DIM = 2, 4, 16
    NUM_COLOR = 8
    HIDDEN = 128       # lane-dense hidden width
    OUT_PAD = 128      # lane-dense padded output width (column 0 is the real prob)

    key = jax.random.PRNGKey(0)
    k_zs, k_w1, k_b1, k_w2 = jax.random.split(key, 4)

    # Object-centric representation (YOLO-style output): (batch, n_obj, obj_dim).
    zs = jax.random.normal(k_zs, (BATCH, N_OBJ, OBJ_DIM), dtype=jnp.float32)

    # FCNN valuation-function weights for predicate "color":
    #   MLP(concat(obj_features, onehot(color))) -> sigmoid -> probability.
    d_in = OBJ_DIM + NUM_COLOR
    w1_full = jax.random.normal(k_w1, (d_in, HIDDEN), jnp.float32) * (d_in ** -0.5)
    w1_obj = w1_full[:OBJ_DIM].astype(jnp.bfloat16)      # object-feature block (MXU)
    w1_attr = w1_full[OBJ_DIM:]                          # one-hot block, kept f32 (row-add)
    b1 = jax.random.normal(k_b1, (1, HIDDEN), jnp.float32) * 0.01
    w2_col = jax.random.normal(k_w2, (HIDDEN, 1), jnp.float32) * (HIDDEN ** -0.5)
    w2 = jnp.pad(w2_col, ((0, 0), (0, OUT_PAD - 1))).astype(jnp.bfloat16)
    b2 = jnp.zeros((1, OUT_PAD), jnp.float32)
    color_vf_params = {"w1_obj": w1_obj, "w1_attr": w1_attr, "b1": b1, "w2": w2, "b2": b2}

    # Language / terms / atom.
    color_terms = tuple(
        Term(c, "color")
        for c in ("red", "green", "blue", "cyan", "magenta", "yellow", "black", "white")
    )
    object_terms = tuple(Term(f"obj{i}", "object") for i in range(N_OBJ))
    group_terms = (Term("group0", "group_data"),)
    lang = Language({"color": color_terms, "object": object_terms, "group_data": group_terms})

    module = FCNNValuationModule(pred_funs={"color": color_vf_params}, lang=lang)

    # color(group0, obj1, red)
    atom = Atom(Pred("color"), (group_terms[0], object_terms[1], color_terms[0]))
    probs = module.forward(zs, atom)
    probs = jax.block_until_ready(probs)
    assert probs.shape == (BATCH,)

    # Pure-JAX reference mirroring the kernel math (same bf16 casts / f32 acc).
    obj_ref = zs[:, 1, :]
    h_ref = jnp.dot(obj_ref.astype(jnp.bfloat16), w1_obj, preferred_element_type=jnp.float32)
    h_ref = jnp.maximum(h_ref + b1 + w1_attr[0:1, :], 0.0)
    y_ref = jnp.dot(h_ref.astype(jnp.bfloat16), w2, preferred_element_type=jnp.float32) + b2
    ref = (1.0 / (1.0 + jnp.exp(-y_ref)))[:, 0]
    assert jnp.allclose(probs, ref, atol=1e-3), (probs, ref)

    # Unknown predicate -> constant zeros(1), no kernel launch.
    zeros = jax.block_until_ready(module.forward(zs, Atom(Pred("not_a_predicate"), ())))
    assert zeros.shape == (1,) and float(zeros[0]) == 0.0

    print("KERNEL_OK")
</pallas_src>

<mosaic_0001>
module attributes {stable_mosaic.version = 11 : i64} {
  func.func @kernel(%arg0: memref<2x4x16xf32, #tpu.memory_space<vmem>>, %arg1: memref<16x128xbf16, #tpu.memory_space<vmem>>, %arg2: memref<8x128xf32, #tpu.memory_space<vmem>>, %arg3: memref<1x128xf32, #tpu.memory_space<vmem>>, %arg4: memref<128x128xbf16, #tpu.memory_space<vmem>>, %arg5: memref<1x128xf32, #tpu.memory_space<vmem>>, %arg6: memref<2x128xf32, #tpu.memory_space<vmem>>) attributes {dimension_semantics = [], scalar_prefetch = 0 : i64, scratch_operands = 0 : i64, tpu.core_type = #tpu.core_type<tc>} {
    %c0 = arith.constant 0 : index
    %c1 = arith.constant 1 : index
    %c0_0 = arith.constant 0 : index
    %0 = vector.load %arg0[%c0, %c1, %c0_0] : memref<2x4x16xf32, #tpu.memory_space<vmem>>, vector<2x1x16xf32>
    %1 = vector.shape_cast %0 : vector<2x1x16xf32> to vector<2x16xf32>
    %2 = arith.truncf %1 : vector<2x16xf32> to vector<2x16xbf16>
    %c0_1 = arith.constant 0 : index
    %c0_2 = arith.constant 0 : index
    %3 = vector.load %arg1[%c0_1, %c0_2] : memref<16x128xbf16, #tpu.memory_space<vmem>>, vector<16x128xbf16>
    %cst = arith.constant dense<0.000000e+00> : vector<2x128xf32>
    %4 = tpu.matmul %2, %3, %cst {dimension_numbers = #tpu.dot_dimension_numbers<[1], [0], [0], [1], [0, 0, 1, 1], [], []>} : vector<2x16xbf16>, vector<16x128xbf16>, vector<2x128xf32> -> vector<2x128xf32>
    %c0_3 = arith.constant 0 : index
    %c0_4 = arith.constant 0 : index
    %5 = vector.load %arg3[%c0_3, %c0_4] : memref<1x128xf32, #tpu.memory_space<vmem>>, vector<1x128xf32>
    %c0_5 = arith.constant 0 : index
    %c0_6 = arith.constant 0 : index
    %6 = vector.load %arg2[%c0_5, %c0_6] : memref<8x128xf32, #tpu.memory_space<vmem>>, vector<1x128xf32>
    %7 = arith.addf %5, %6 : vector<1x128xf32>
    %8 = vector.broadcast %7 : vector<1x128xf32> to vector<2x128xf32>
    %9 = arith.addf %4, %8 : vector<2x128xf32>
    %cst_7 = arith.constant 0.000000e+00 : f32
    %10 = vector.broadcast %cst_7 : f32 to vector<2x128xf32>
    %11 = arith.maximumf %9, %10 : vector<2x128xf32>
    %12 = arith.truncf %11 : vector<2x128xf32> to vector<2x128xbf16>
    %c0_8 = arith.constant 0 : index
    %c0_9 = arith.constant 0 : index
    %13 = vector.load %arg4[%c0_8, %c0_9] : memref<128x128xbf16, #tpu.memory_space<vmem>>, vector<128x128xbf16>
    %cst_10 = arith.constant dense<0.000000e+00> : vector<2x128xf32>
    %14 = tpu.matmul %12, %13, %cst_10 {dimension_numbers = #tpu.dot_dimension_numbers<[1], [0], [0], [1], [0, 0, 1, 1], [], []>} : vector<2x128xbf16>, vector<128x128xbf16>, vector<2x128xf32> -> vector<2x128xf32>
    %c0_11 = arith.constant 0 : index
    %c0_12 = arith.constant 0 : index
    %15 = vector.load %arg5[%c0_11, %c0_12] : memref<1x128xf32, #tpu.memory_space<vmem>>, vector<1x128xf32>
    %16 = vector.broadcast %15 : vector<1x128xf32> to vector<2x128xf32>
    %17 = arith.addf %14, %16 : vector<2x128xf32>
    %cst_13 = arith.constant 0.000000e+00 : f32
    %18 = vector.broadcast %cst_13 : f32 to vector<2x128xf32>
    %19 = arith.subf %18, %17 : vector<2x128xf32>
    %20 = math.exp %19 : vector<2x128xf32>
    %cst_14 = arith.constant 1.000000e+00 : f32
    %21 = vector.broadcast %cst_14 : f32 to vector<2x128xf32>
    %22 = arith.addf %21, %20 : vector<2x128xf32>
    %cst_15 = arith.constant 1.000000e+00 : f32
    %23 = vector.broadcast %cst_15 : f32 to vector<2x128xf32>
    %24 = arith.divf %23, %22 : vector<2x128xf32>
    %c0_16 = arith.constant 0 : index
    %c0_17 = arith.constant 0 : index
    %25 = vector.load %arg6[%c0_16, %c0_17] : memref<2x128xf32, #tpu.memory_space<vmem>>, vector<2x128xf32>
    tpu.vector_store %arg6[%c0_16, %c0_17], %24 {strides = array<i32>} : memref<2x128xf32, #tpu.memory_space<vmem>>, vector<2x128xf32>,
    return
  }
}

</mosaic_0001>

<bundles_post_ra>
// kernel: tpu_custom_call.1
= control target key start
LH: loop header
LB: loop body
LE: loop exit
PB: predicated region body
PF: predicated region fallthrough
CT: control target
= control target key end

     0   :  { %11 = vsyncpa [#allocation3], 0  ;;  %s500_s0 = inlined_call_operand.hbm [shape: f32[2,4,16], index: 0, kind: input, shape index: {}]   ;;  %s501_s1 = inlined_call_operand.hbm [shape: bf16[16,128], index: 1, kind: input, shape index: {}]   ;;  %s502_s2 = inlined_call_operand.hbm [shape: f32[8,128], index: 2, kind: input, shape index: {}]   ;;  %s503_s3 = inlined_call_operand.vmem [shape: f32[1,128], index: 3, kind: input, shape index: {}]   ;;  %s504_s4 = inlined_call_operand.hbm [shape: bf16[128,128], index: 4, kind: input, shape index: {}]   ;;  %s505_s5 = inlined_call_operand.vmem [shape: f32[1,128], index: 5, kind: input, shape index: {}]   ;;  %s506_s6 = inlined_call_operand.hbm [shape: f32[2,128], index: 6, kind: output, shape index: {}]  }
   0x1   :  { %12 = vsyncpa [#allocation6], 0 }
   0x2   :  { %13 = vsyncpa [#allocation9], 0 }
   0x3   :  { %14 = vsyncpa [#allocation4], 0  ;;  %s32_s23 = sshll.u32 %s501_s1, 4  ;;  %s437_s24 = smov [#allocation5]   ;;  %s33_s23 = int_to_ptr.hbm [resolvable:$true] %s32_s23 }
   0x4   :  { %s34_s25 = sshll.u32 %s437_s24, 4  ;;  %s19_s28 = sshll.u32 %s500_s0, 4  ;;  %s35_s25 = int_to_ptr.vmem [resolvable:$true] %s34_s25  ;;  %s20_s28 = int_to_ptr.hbm [resolvable:$true] %s19_s28 }
   0x5   :  { %s438_s29 = smov 64   ;;  %s439_s30 = smov 4  }
   0x6   :  { %40 = dma.hbm_to_vmem [thread:$0]  %s33_s23, 128, %s35_s25, [#allocation6], %s438_s29, %s438_s29, %s439_s30  }
   0x7   :  { %s440_s7 = smov [#allocation2]   ;;  %s46_s11 = sshll.u32 %s502_s2, 4  ;;  %s47_s11 = int_to_ptr.hbm [resolvable:$true] %s46_s11 }
   0x8   :  { %s21_s8 = sshll.u32 %s440_s7, 4  ;;  %s58_s13 = sshll.u32 %s504_s4, 4  ;;  %s22_s8 = int_to_ptr.vmem [resolvable:$true] %s21_s8  ;;  %s59_s13 = int_to_ptr.hbm [resolvable:$true] %s58_s13 }
   0x9   :  { %27 = dma.hbm_to_vmem [thread:$0]  %s20_s28, 128, %s22_s8, [#allocation3], %s438_s29, %s438_s29, %s439_s30  }
   0xa   :  { %s441_s14 = smov [#allocation7]   ;;  %s442_s0 = smov [#allocation8]  }
   0xb   :  { %s48_s15 = sshll.u32 %s441_s14, 4  ;;  %s60_s16 = sshll.u32 %s442_s0, 4  ;;  %s49_s15 = int_to_ptr.vmem [resolvable:$true] %s48_s15  ;;  %s61_s16 = int_to_ptr.vmem [resolvable:$true] %s60_s16 }
   0xc   :  { %51 = dma.hbm_to_vmem [thread:$0]  %s47_s11, 128, %s49_s15, [#allocation6]  }
   0xd   :  { %66 = dma.hbm_to_vmem [thread:$0]  %s59_s13, 1024, %s61_s16, [#allocation9], %s438_s29, %s438_s29, %s439_s30  }
   0xe   :  { %429 = dma.done.wait [#allocation3], 128  }
   0xf   :  { %430 = vsyncadd [#allocation3], 4294967168 }
  0x10   :  { %431 = dma.done.wait [#allocation6], 256  }
  0x11   :  { %432 = vsyncadd [#allocation6], 4294967040 }
  0x12   :  { %433 = dma.done.wait [#allocation9], 1024  }
  0x13   :  { %434 = vsyncadd [#allocation9], 4294966272  ;;  %v288_v0 = vld [vmem:[#allocation5] sm:$0xff]  ;;  %v86_v1 = vld [vmem:[#allocation2 + $0x1] sm:$0x1]  ;;  %vm103_vm0 = vcmask 1041409  }
  0x14   :  { %v87_v2 = vld [vmem:[#allocation2 + $0x5] sm:$0x1]  ;;  %v88_v3 = vpack.c.bf16 %v86_v1, %v86_v1  ;;  %v296_v5 = vld [vmem:[#allocation8 + $0x38] sm:$0xff]  ;;  %123 = vmatpush.bf16.msra.mxu0 %v288_v0  ;;  %v295_v8 = vld [vmem:[#allocation8 + $0x30] sm:$0xff]  ;;  %vm112_vm1 = vcmask 130048   ;;  %s239_s21 = sshll.u32 %s506_s6, 4  ;;  %s240_s21 = int_to_ptr.hbm [resolvable:$true] %s239_s21 }
  0x15   :  { %v89_v4 = vpack.c.bf16 %v87_v2, %v87_v2  ;;  %199 = vmatpush.bf16.msra.mxu1 %v296_v5  ;;  %v294_v11 = vld [vmem:[#allocation8 + $0x28] sm:$0xff]  ;;  %v293_v13 = vld [vmem:[#allocation8 + $0x20] sm:$0xff]  ;;  %v292_v14 = vld [vmem:[#allocation8 + $0x18] sm:$0xff] }
  0x16   :  { %v100_v6 = vunpack.c.l.b16 %v88_v3  ;;  %v291_v15 = vld [vmem:[#allocation8 + $0x10] sm:$0xff]  ;;  %v290_v16 = vld [vmem:[#allocation8 + $0x8] sm:$0xff]  ;;  %v289_v17 = vld [vmem:[#allocation8] sm:$0xff] }
  0x17   :  { %v101_v7 = vunpack.c.l.b16 %v89_v4  ;;  %v92_v18 = vld [vmem:[%s503_s3] sm:$0x1]  ;;  %v93_v19 = vld [vmem:[#allocation7] sm:$0x1]  ;;  %s443_s3 = smov [#allocation10]  }
  0x18   :  { %v94_v20 = vadd.f32 %v93_v19, %v92_v18  ;;  %v304_v27 = vld [vmem:[%s505_s5] ss:$0 sm:$0xff]  ;;  %s237_s19 = sshll.u32 %s443_s3, 4  ;;  %s238_s19 = int_to_ptr.vmem [resolvable:$true] %s237_s19 }
  0x19   :  { %v102_v9 = vrot.slane %v101_v7, 7  ;;  %200 = vmatpush.bf16.msra.mxu1 %v295_v8 }
  0x1a   :  { %v96_v21 = vperm.slane %v94_v20, 0 }
  0x1b   :  { %v104_v10 = vsel %vm103_vm0, %v102_v9, %v100_v6 }
  0x1c   :  { %v105_v12 = vpack.c.b16 %v104_v10, %v104_v10 }
  0x1d   :  { %201 = vmatpush.bf16.msra.mxu1 %v294_v11 }
  0x1e   :  { %255 = vmatmul.msk.bf16.vlgmr.msra.gmra.mxu0 %vm112_vm1, %v105_v12 }
  0x21   :  { %202 = vmatpush.bf16.msra.mxu1 %v293_v13 }
  0x25   :  { %203 = vmatpush.bf16.msra.mxu1 %v292_v14 }
  0x29   :  { %204 = vmatpush.bf16.msra.mxu1 %v291_v15 }
  0x2d   :  { %205 = vmatpush.bf16.msra.mxu1 %v290_v16 }
  0x31   :  { %206 = vmatpush.bf16.msra.mxu1 %v289_v17 }
  0x9b   :  { %v125_v22 = vpop.f32.mrf.mxu0 }
  0x9c   :  { %v126_v23 = vadd.f32 %v125_v22, %v96_v21 }
  0x9e   :  { %v129_v24 = vmax.f32 %v126_v23, 0.0 }
  0xa0   :  { %v130_v25 = vpack.c.bf16 %v129_v24, %v129_v24 }
  0xa2   :  { %207 = vmatmul.bf16.vlgmr.msra.gmra.mxu1 %v130_v25 }
  0xa3   :  { %v127_v26 = vpop.f32.mrf.mxu0 }
 0x11f   :  { %v208_v28 = vpop.f32.mrf.mxu1 }
 0x120   :  { %v209_v29 = vadd.f32 %v304_v27, %v208_v28 }
 0x122   :  { %v212_v30 = vsub.f32 0.0, %v209_v29 }
 0x124   :  { %v213_v31 = vmul.f32 1.442695, %v212_v30 }
 0x126   :  { %305 = vpow2.f32 %v213_v31 }
 0x127   :  { %v210_v32 = vpop.f32.mrf.mxu1 }
 0x12c   :  { %v306_v33 = vpop.eup %305 }
 0x12d   :  { %v215_v34 = vadd.f32 1.0, %v306_v33 }
 0x12f   :  { %307 = vrcp.f32 %v215_v34  ;;  %v227_v38 = vand.u32 2147483648, %v215_v34  ;;  %v225_v40 = vand.u32 2147483647, %v215_v34  ;;  %vm221_vm3 = vweird.f32 %v215_v34 }
 0x131   :  { %v228_v42 = vor.u32 1.1754944e-38, %v227_v38  ;;  %vm226_vm5 = vcmp.eq.f32.partialorder %v225_v40, 8.507059e+37 }
 0x135   :  { %v308_v35 = vpop.eup %307 }
 0x136   :  { %v217_v36 = vmul.f32 %v308_v35, %v215_v34  ;;  %vm222_vm2 = vweird.f32 %v308_v35 }
 0x137   :  { %vm223_vm4 = vmor %vm221_vm3, %vm222_vm2 }
 0x138   :  { %v218_v37 = vsub.f32 1.0, %v217_v36 }
 0x13a   :  { %v219_v39 = vmul.f32 %v308_v35, %v218_v37 }
 0x13c   :  { %v220_v41 = vadd.f32 %v308_v35, %v219_v39 }
 0x13e   :  { %v224_v43 = vsel %vm223_vm4, %v308_v35, %v220_v41 }
 0x13f   :  { %v229_v44 = vsel %vm226_vm5, %v228_v42, %v224_v43 }
 0x140   :  { %231 = vst [vmem:[#allocation10] sm:$0x3] %v229_v44 }
 0x141   :  { %242 = dma.vmem_to_hbm [thread:$0]  %s238_s19, 32, %s240_s21, [#allocation4]  }
 0x142   :  { %435 = dma.done.wait [#allocation4], 32  }
 0x143   :  { %436 = vsyncadd [#allocation4], 4294967264 }
 0x144   :  { %247 = vsyncpa [#allocation3], 1 }
 0x145   :  { %248 = vsyncpa [#allocation6], 1 }
 0x146   :  { %249 = vsyncpa [#allocation9], 1 }
 0x147   :  { %250 = vsyncpa [#allocation4], 1 }

</bundles_post_ra>
